<compile_context>
chip_gen: v7x
topology: tpu7x:2x2x1
jax: 0.10.0
libtpu: 0.0.40
codegen_flags: <defaults>
</compile_context>

<pallas_src>
import functools

import jax
import jax.numpy as jnp
from jax import lax
from jax.experimental import pallas as pl
from jax.experimental.pallas import tpu as pltpu


def _cdiv(a, b):
    return -(-a // b)


def _round_up(x, m):
    return _cdiv(x, m) * m


def _sublane_multiple(dtype):
    # f32 -> 8, bf16/f16 -> 16, int8/fp8 -> 32 (packed-sublane tiling)
    itemsize = jnp.dtype(dtype).itemsize
    return 8 * max(1, 4 // itemsize)


def _embed_kernel(x_ref, w_ref, b_ref, o_ref):
    # x_ref: (tm, K) patches, w_ref: (K, Np) resident weights, b_ref: (1, Np) f32 bias
    acc = jnp.dot(x_ref[...], w_ref[...], preferred_element_type=jnp.float32)
    o_ref[...] = (acc + b_ref[...]).astype(o_ref.dtype)


def _embed_kernel_ktiled(x_ref, w_ref, b_ref, o_ref, acc_ref):
    # Large-K fallback: grid = (M tiles, K tiles), K innermost / "arbitrary".
    k = pl.program_id(1)

    @pl.when(k == 0)
    def _():
        acc_ref[...] = jnp.zeros_like(acc_ref)

    acc_ref[...] += jnp.dot(x_ref[...], w_ref[...], preferred_element_type=jnp.float32)

    @pl.when(k == pl.num_programs(1) - 1)
    def _():
        o_ref[...] = (acc_ref[...] + b_ref[...]).astype(o_ref.dtype)


@functools.partial(jax.jit, static_argnames=("patch_size", "compute_dtype"))
def conv_patch_embedding(x, weight, bias, *, patch_size, compute_dtype=None):
    """x: (B, C, H, W) NCHW; weight: (hidden, C, P, P); bias: (hidden,).

    Returns (B, (H//P)*(W//P), hidden), matching the PyTorch module.
    compute_dtype: optional MXU input dtype.  jnp.bfloat16 is recommended on all
    TPU generations (the kernel is memory-bound; v5e benefits the most), with
    float32 accumulation.  Default (None) keeps x.dtype for exact parity; the
    bf16 path trades precision for bandwidth and is NOT bit-exact.
    """
    B, C, H, W = x.shape
    P = patch_size
    hidden = weight.shape[0]
    Hp, Wp = H // P, W // P
    out_dtype = x.dtype
    if compute_dtype is None:
        compute_dtype = x.dtype

    # ---- glue: patch extraction + weight flatten.  The 6-D reshape/transpose is
    # left to XLA (one contiguous (M, K) materialization -> full-line input DMAs).
    # TODO(synk): fully in-kernel patch extraction needs a 5-D transpose that Mosaic
    # does not lower cleanly; if xprof shows the transpose dominating, accept NHWC
    # input instead so K is contiguous in HBM.
    patches = (
        x.reshape(B, C, Hp, P, Wp, P)
        .transpose(0, 2, 4, 1, 3, 5)          # (B, Hp, Wp, C, P, P)
        .reshape(B * Hp * Wp, C * P * P)      # (M, K), patch index = h'*Wp + w'
        .astype(compute_dtype)
    )
    w_mat = weight.reshape(hidden, C * P * P).T.astype(compute_dtype)  # (K, N)
    b_mat = bias.reshape(1, hidden).astype(jnp.float32)

    M, K = patches.shape
    N = hidden

    in_bytes = jnp.dtype(compute_dtype).itemsize
    out_bytes = jnp.dtype(out_dtype).itemsize

    # ---- lane-dense hidden dim: pad N to a multiple of 128, never further --------
    Np = _round_up(N, 128)
    if Np != N:
        w_mat = jnp.pad(w_mat, ((0, 0), (0, Np - N)))   # small, one-time
        b_mat = jnp.pad(b_mat, ((0, 0), (0, Np - N)))

    # ---- tile selection -----------------------------------------------------------
    sub = max(_sublane_multiple(compute_dtype), _sublane_multiple(out_dtype))
    BUDGET = 40 << 20          # per-step VMEM footprint target (v7x-safe)

    def footprint(tm, tk, w_bufs):
        return (w_bufs * tk * Np * in_bytes              # weight buffer(s)
                + Np * 4                                 # bias (f32)
                + 2 * tm * tk * in_bytes                 # double-buffered patch tile
                + 2 * tm * Np * out_bytes                # double-buffered output tile
                + (0 if w_bufs == 1 else tm * Np * 4))   # f32 accumulator scratch

    # Row tile: up to 512 rows, rounded to the sublane packing; split so the M grid
    # has >= 2 parallel steps whenever possible (v7x has 2 TensorCores per chip).
    tm = min(512, _round_up(M, sub))
    if tm >= _round_up(M, sub) and M > sub:
        tm = _round_up(_cdiv(M, 2), sub)

    # Prefer the weight-resident path; shrink tm (not below 128) before giving it up.
    tk, w_resident = K, True
    while tm > max(sub, 128) and footprint(tm, K, 1) > BUDGET:
        tm = max(max(sub, 128), _round_up(tm // 2, sub))
    if footprint(tm, K, 1) > BUDGET and K % 128 == 0 and K > 128:
        # Large-K (e.g. 3-D MONAI, K = C*P^3): tile K with an f32 accumulator.
        w_resident = False
        tk = next((t for t in (2048, 1024, 512, 256, 128)
                   if K % t == 0 and footprint(tm, t, 2) <= BUDGET), 128)
        while tm > sub and footprint(tm, tk, 2) > BUDGET:
            tm = max(sub, _round_up(tm // 2, sub))
    elif footprint(tm, K, 1) > BUDGET:
        # TODO(synk): K too large for residency but not a multiple of 128 - keep the
        # resident path and just shrink tm (ragged-K tiling would corrupt the sum).
        while tm > sub and footprint(tm, K, 1) > BUDGET:
            tm = max(sub, _round_up(tm // 2, sub))

    m_steps = _cdiv(M, tm)

    # ---- cost / compiler params ----------------------------------------------------
    w_reads = 1 if w_resident else m_steps
    cost = pl.CostEstimate(
        flops=2 * M * K * Np,
        transcendentals=0,
        bytes_accessed=in_bytes * (M * K + w_reads * K * Np) + 4 * Np
        + out_bytes * M * Np,
    )
    fp = footprint(tm, tk, 1 if w_resident else 2)
    vmem_limit = int(min(max(2 * fp, 16 << 20), 48 << 20))

    if w_resident:
        out = pl.pallas_call(
            _embed_kernel,
            out_shape=jax.ShapeDtypeStruct((M, Np), out_dtype),
            grid_spec=pltpu.PrefetchScalarGridSpec(
                num_scalar_prefetch=0,
                grid=(m_steps,),
                in_specs=[
                    pl.BlockSpec((tm, K), lambda i: (i, 0)),    # patch-row tile
                    pl.BlockSpec((K, Np), lambda i: (0, 0)),    # weight: resident, one DMA
                    pl.BlockSpec((1, Np), lambda i: (0, 0)),    # bias: resident
                ],
                out_specs=pl.BlockSpec((tm, Np), lambda i: (i, 0)),
            ),
            compiler_params=pltpu.CompilerParams(
                dimension_semantics=("parallel",),
                vmem_limit_bytes=vmem_limit,
            ),
            cost_estimate=cost,
        )(patches, w_mat, b_mat)
    else:
        k_steps = K // tk
        out = pl.pallas_call(
            _embed_kernel_ktiled,
            out_shape=jax.ShapeDtypeStruct((M, Np), out_dtype),
            grid_spec=pltpu.PrefetchScalarGridSpec(
                num_scalar_prefetch=0,
                grid=(m_steps, k_steps),
                in_specs=[
                    pl.BlockSpec((tm, tk), lambda i, k: (i, k)),
                    pl.BlockSpec((tk, Np), lambda i, k: (k, 0)),
                    pl.BlockSpec((1, Np), lambda i, k: (0, 0)),
                ],
                out_specs=pl.BlockSpec((tm, Np), lambda i, k: (i, 0)),
                scratch_shapes=[pltpu.VMEM((tm, Np), jnp.float32)],
            ),
            compiler_params=pltpu.CompilerParams(
                dimension_semantics=("parallel", "arbitrary"),
                vmem_limit_bytes=vmem_limit,
            ),
            cost_estimate=cost,
        )(patches, w_mat, b_mat)

    if Np != N:
        out = out[:, :N]
    return out.reshape(B, Hp * Wp, N)


if __name__ == "__main__":
    # shapes consistent with the module: spatial_dims=2, in_channels=4,
    # patch_size=4, hidden_size=32, input (2, 4, 16, 16)
    B, C, H, W = 2, 4, 16, 16
    P = 4
    hidden = 32

    key = jax.random.PRNGKey(0)
    kx, kw, kb = jax.random.split(key, 3)
    x = jax.random.normal(kx, (B, C, H, W), dtype=jnp.float32)
    weight = jax.random.normal(kw, (hidden, C, P, P), dtype=jnp.float32) * 0.05
    bias = jax.random.normal(kb, (hidden,), dtype=jnp.float32) * 0.05

    out = jax.block_until_ready(conv_patch_embedding(x, weight, bias, patch_size=P))

    # reference: real strided conv (NCHW) + rearrange 'B C h w -> B (h w) C'
    ref = lax.conv_general_dilated(
        x, weight, window_strides=(P, P), padding="VALID",
        dimension_numbers=("NCHW", "OIHW", "NCHW"),
    ) + bias[None, :, None, None]
    ref = ref.reshape(B, hidden, -1).transpose(0, 2, 1)

    assert out.shape == (B, (H // P) * (W // P), hidden), out.shape
    assert jnp.allclose(out, ref, atol=1e-4, rtol=1e-4), float(jnp.abs(out - ref).max())

    # bf16 MXU-input path (recommended on v5e/v6e/v7x; kernel is mem-bound),
    # f32 accumulation; loose tolerance since inputs are rounded to bf16.
    out_bf16 = jax.block_until_ready(
        conv_patch_embedding(x, weight, bias, patch_size=P, compute_dtype=jnp.bfloat16)
    )
    assert jnp.allclose(out_bf16.astype(jnp.float32), ref, atol=1e-1), float(
        jnp.abs(out_bf16.astype(jnp.float32) - ref).max()
    )

    print("KERNEL_OK")
</pallas_src>

<mosaic_0001>
module attributes {stable_mosaic.version = 11 : i64} {
  func.func @_embed_kernel(%arg0: i32, %arg1: memref<16x64xf32, #tpu.memory_space<vmem>>, %arg2: memref<64x128xf32, #tpu.memory_space<vmem>>, %arg3: memref<1x128xf32, #tpu.memory_space<vmem>>, %arg4: memref<16x128xf32, #tpu.memory_space<vmem>>) attributes {dimension_semantics = [#tpu.dimension_semantics<parallel>], iteration_bounds = array<i64: 2>, scalar_prefetch = 0 : i64, scratch_operands = 0 : i64, tpu.core_type = #tpu.core_type<tc>, window_params = [{transform_indices = @transform_0, window_bounds = array<i64: 16, 64>}, {pipeline_mode = #tpu.pipeline_mode<synchronous>, transform_indices = @transform_1, window_bounds = array<i64: 64, 128>}, {pipeline_mode = #tpu.pipeline_mode<synchronous>, transform_indices = @transform_2, window_bounds = array<i64: 1, 128>}, {transform_indices = @transform_3, window_bounds = array<i64: 16, 128>}]} {
    %c0 = arith.constant 0 : index
    %c0_0 = arith.constant 0 : index
    %0 = vector.load %arg1[%c0, %c0_0] : memref<16x64xf32, #tpu.memory_space<vmem>>, vector<16x64xf32>
    %c0_1 = arith.constant 0 : index
    %c0_2 = arith.constant 0 : index
    %1 = vector.load %arg2[%c0_1, %c0_2] : memref<64x128xf32, #tpu.memory_space<vmem>>, vector<64x128xf32>
    %cst = arith.constant dense<0.000000e+00> : vector<16x128xf32>
    %2 = tpu.matmul %0, %1, %cst {dimension_numbers = #tpu.dot_dimension_numbers<[1], [0], [0], [1], [0, 0, 1, 1], [], []>} : vector<16x64xf32>, vector<64x128xf32>, vector<16x128xf32> -> vector<16x128xf32>
    %c0_3 = arith.constant 0 : index
    %c0_4 = arith.constant 0 : index
    %3 = vector.load %arg3[%c0_3, %c0_4] : memref<1x128xf32, #tpu.memory_space<vmem>>, vector<1x128xf32>
    %4 = vector.broadcast %3 : vector<1x128xf32> to vector<16x128xf32>
    %5 = arith.addf %2, %4 : vector<16x128xf32>
    %c0_5 = arith.constant 0 : index
    %c0_6 = arith.constant 0 : index
    %6 = vector.load %arg4[%c0_5, %c0_6] : memref<16x128xf32, #tpu.memory_space<vmem>>, vector<16x128xf32>
    tpu.vector_store %arg4[%c0_5, %c0_6], %5 {strides = array<i32>} : memref<16x128xf32, #tpu.memory_space<vmem>>, vector<16x128xf32>,
    return
  }
  func.func @transform_0(%arg0: i32) -> (i32, i32) {
    %c0_i32 = arith.constant 0 : i32
    %c0_i32_0 = arith.constant 0 : i32
    return %arg0, %c0_i32 : i32, i32
  }
  func.func @transform_1(%arg0: i32) -> (i32, i32) {
    %c0_i32 = arith.constant 0 : i32
    %c0_i32_0 = arith.constant 0 : i32
    %c0_i32_1 = arith.constant 0 : i32
    return %c0_i32, %c0_i32_0 : i32, i32
  }
  func.func @transform_2(%arg0: i32) -> (i32, i32) {
    %c0_i32 = arith.constant 0 : i32
    %c0_i32_0 = arith.constant 0 : i32
    %c0_i32_1 = arith.constant 0 : i32
    return %c0_i32, %c0_i32_0 : i32, i32
  }
  func.func @transform_3(%arg0: i32) -> (i32, i32) {
    %c0_i32 = arith.constant 0 : i32
    %c0_i32_0 = arith.constant 0 : i32
    return %arg0, %c0_i32 : i32, i32
  }
}

</mosaic_0001>

<bundles_post_ra>
// kernel: conv_patch_embedding.1
= control target key start
LH: loop header
LB: loop body
LE: loop exit
PB: predicated region body
PF: predicated region fallthrough
CT: control target
= control target key end

     0   :  { %8 = vsyncpa [#allocation3], 0  ;;  %s667_s0 = inlined_call_operand.vmem [shape: f32[32,64], index: 0, kind: input, shape index: {}]   ;;  %s668_s1 = inlined_call_operand.vmem [shape: f32[64,128], index: 1, kind: input, shape index: {}]   ;;  %s669_s2 = inlined_call_operand.vmem [shape: f32[1,128], index: 2, kind: input, shape index: {}]   ;;  %s670_s3 = inlined_call_operand.hbm [shape: f32[32,128], index: 3, kind: output, shape index: {}]  }
   0x1   :  { %10 = vsyncpa [#allocation3 + $0x1], 0  ;;  %s538_s12 = smov 0   ;;  %s540_s13 = smov 0  }
   0x2   :  { %s542_s14 = smov 0   ;;  %s544_s15 = smov 0  }
   0x3 LB: > { %s559_s16 = sadd.s32 4294967295, %s513_s15   ;;  %s349_s17 = sadd.s32 4294967294, %s513_s15   ;;  %s513_s15 = sphi %s544_s15, %s676_s15   ;;  %s509_s14 = sphi %s542_s14, %s675_s14   ;;  %s505_s13 = sphi %s540_s13, %s674_s13   ;;  %s501_s12 = sphi %s538_s12, %s673_s12  }
   0x4   : > { %s563_s18 = sadd.s32 1, %s513_s15   ;;  %s91_s19 = sadd.s32 1, %s509_s14 }
   0x5   : > { %s88_s20 = ssub.s32 %s513_s15, %s563_s18  ;;  %p101_p0 = scmp.ne.s32.totalorder %s509_s14, %s505_s13 }
   0x6   : > { %p89_p1 = scmp.eq.s32.totalorder %s88_s20, 0  ;;  %p102_p2 = scmp.eq.s32.totalorder %s559_s16, 1 }
   0x7   : > { %p107_p3 = scmp.ne.s32.totalorder %s505_s13, %s501_s12  ;;  %p108_p4 = scmp.eq.s32.totalorder %s349_s17, 1 }
   0x8   : > { %s574_s21 = scalar_select %p89_p1, %s509_s14, %s91_s19  }
   0x9   : > { %p576_p5 = por %p102_p2, %p101_p0  ;;  %p580_p6 = por %p108_p4, %p107_p3 }
   0xa   : > { %p352_p7 = scmp.ge.s32.totalorder %s513_s15, 1  ;;  %p141_p8 = scmp.lt.s32.totalorder %s513_s15, 3 }
   0xc   : > { %p142_p9 = pnand %p352_p7, %p141_p8 }
   0xd   : > { %v174_v0 = vld [vmem:[%s668_s1] sm:$0xff] (!%p142_p9)  ;;  %v175_v1 = vld [vmem:[%s668_s1 + $0x8] sm:$0xff] (!%p142_p9)  ;;  %v176_v2 = vld [vmem:[%s668_s1 + $0x10] sm:$0xff] (!%p142_p9)  ;;  %s354_s30 = sshll.u32 (!%p142_p9), %s559_s16, 1  ;;  %vm189_vm0 = vcmask (!%p142_p9), 523264   ;;  %s162_s27 = sand.u32 (!%p142_p9), 1, %s505_s13  }
   0xe   : > { %145 = sbr.rel (%p142_p9) target bundleno = 262 (0x106), region = 32  ;;  %v394_v3 = vpack.c.bf16 (!%p142_p9), %v175_v1, %v174_v0  ;;  %v177_v4 = vld [vmem:[%s668_s1 + $0x18] sm:$0xff] (!%p142_p9)  ;;  %p166_p10 = scmp.lt.s32.totalorder (!%p142_p9), %s354_s30, 3  ;;  %v178_v6 = vld [vmem:[%s668_s1 + $0x20] sm:$0xff] (!%p142_p9)  ;;  %v179_v7 = vld [vmem:[%s668_s1 + $0x28] sm:$0xff] (!%p142_p9) }
   0xf   : > { %v398_v5 = vpack.c.bf16 (!%p142_p9), %v177_v4, %v176_v2  ;;  %v402_v8 = vpack.c.bf16 (!%p142_p9), %v179_v7, %v178_v6  ;;  %v180_v9 = vld [vmem:[%s668_s1 + $0x30] sm:$0xff] (!%p142_p9)  ;;  %v181_v10 = vld [vmem:[%s668_s1 + $0x38] sm:$0xff] (!%p142_p9)  ;;  %s353_s28 = sshll.u32 (!%p142_p9), %s162_s27, 4  ;;  %v356_v14 = vld [vmem:[%s669_s2] ss:$0 sm:$0xff] (!%p142_p9)  ;;  %s364_s6 = sshll.u32 (!%p142_p9), %s559_s16, 8 }
  0x10   : > { %395 = vmatprep.subr.bf16.mxu0 (!%p142_p9), %v394_v3  ;;  %v406_v12 = vpack.c.bf16 (!%p142_p9), %v181_v10, %v180_v9  ;;  %s164_s4 = scalar_lea.vmem (!%p142_p9), [#allocation2], %s353_s28  ;;  %s624_s9 = scalar_lea.hbm (!%p142_p9), %s670_s3, %s364_s6 }
  0x11   : > { %397 = vmatpush3.bf16.msra.mxu0 (!%p142_p9), %v394_v3  ;;  %s287_s5 = sshll.u32 (!%p142_p9), %s164_s4, 4  ;;  %s515_s16 = smov (!%p142_p9), [#allocation2]   ;;  %s619_s5 = int_to_ptr.vmem [resolvable:$true] %s287_s5 }
  0x12   : > { %399 = vmatprep.subr.bf16.mxu0 (!%p142_p9), %v398_v5  ;;  %s451_s11 = scalar_lea.vmem (!%p142_p9), %s619_s5, 256  ;;  %s455_s17 = sshll.u32 (!%p142_p9), %s515_s16, 4  ;;  %s456_s17 = int_to_ptr.vmem [resolvable:$false] %s455_s17 }
  0x13   : > { %p452_p11 = scmp.ne.s32.totalorder (!%p142_p9), %s619_s5, %s451_s11  ;;  %s457_s19 = scalar_lea.vmem (!%p142_p9), %s456_s17, 512 }
  0x14   : > { %p458_p0 = scmp.lt.s32.totalorder (!%p142_p9), %s619_s5, %s456_s17  ;;  %p459_p1 = scmp.lt.s32.totalorder (!%p142_p9), %s457_s19, %s451_s11 }
  0x15   : > { %s678_s30 = smov (!%p166_p10, %s354_s30), 3  ;;  %401 = vmatpush3.bf16.msra.mxu0 %v398_v5  ;;  %p453_p12 = pnand %p452_p11, %p576_p5 }
  0x16   : > { %s355_s10 = sshll.u32 %s678_s30, 3  ;;  %403 = vmatprep.subr.bf16.mxu0 %v402_v8  ;;  %p460_p2 = por %p459_p1, %p458_p0 }
  0x17   : > { %s169_s26 = scalar_lea.vmem %s667_s0, %s355_s10  ;;  %s626_s10 = scalar_lea.sflag [#allocation3], %s162_s27 }
  0x18   : > { %v172_v11 = vld [vmem:[%s169_s26] sm:$0xff]  ;;  %v173_v13 = vld [vmem:[%s169_s26 + $0x8] sm:$0xff]  ;;  %p454_p13 = pneg %p453_p12 }
  0x19   : > { %391 = vmatprep.mubr.msk.f32.mxu0 %vm189_vm0, %v172_v11  ;;  %405 = vmatpush3.bf16.msra.mxu0 %v402_v8 }
  0x1a   : > { %407 = vmatprep.subr.bf16.mxu0 %v406_v12  ;;  %p461_p3 = pnand %p460_p2, %p454_p13 }
  0x1d   : > { %409 = vmatpush3.bf16.msra.mxu0 %v406_v12 }
  0x20   : > { %392 = vmatmul.mubr.msk.f32.vlgmr.msra.gmra.mrb[0].mxu0 %vm189_vm0, %v173_v13 }
  0xf3   : > { %v393_v15 = vpop.f32.mrb[0].mxu0 }
  0xf4   : > { %v268_v16 = vadd.f32 %v393_v15, %v356_v14  ;;  %v262_v17 = vpop.f32.mrb[1].mxu0 }
  0xf5   : > { %v263_v18 = vadd.f32 %v356_v14, %v262_v17 }
  0xf6   : > { %272 = vst [vmem:[%s164_s4 + $0x8] sm:$0xff] %v268_v16 }
  0xf7   : > { %271 = vst [vmem:[%s164_s4] sm:$0xff] %v263_v18 }
  0xf8   : > { %464 = shalt.err (!%p461_p3)
}
  0xf9   : > { %s465_s20 = scalar_lea.hbm %s624_s9, 256  ;;  %s469_s26 = scalar_lea.hbm %s670_s3, 512 }
  0xfa   : > { %p466_p4 = scmp.ne.s32.totalorder %s624_s9, %s465_s20  ;;  %p470_p9 = scmp.lt.u32.totalorder %s624_s9, %s670_s3 }
  0xfb   : > { %p471_p10 = scmp.lt.u32.totalorder %s469_s26, %s465_s20  ;;  %p473_p12 = scmp.lt.u32.totalorder %s465_s20, %s624_s9 }
  0xfc   : > { %p467_p7 = pnand %p466_p4, %p576_p5 }
  0xfd   : > { %p472_p11 = por %p471_p10, %p470_p9 }
  0xfe   : > { %p468_p8 = pneg %p467_p7 }
  0xff   : > { %p474_p13 = por %p473_p12, %p472_p11 }
 0x101   : > { %p475_p0 = pnand %p474_p13, %p468_p8 }
 0x103   : > { %478 = shalt.err (!%p475_p0)
}
 0x104   : > { %s516_s29 = smov 128   ;;  %s517_s30 = smov 8  }
 0x105   : > { %410 = dma.vmem_to_hbm [thread:$0]  (%p576_p5), %s619_s5, 256, %s624_s9, %s626_s10, %s516_s29, %s516_s29, %s517_s30  }
 0x106 PF: > { %p416_p1 = scmp.ge.s32.totalorder %s513_s15, 2  ;;  %s302_s4 = sand.u32 1, %s501_s12  }
 0x107   : > { %s303_s6 = scalar_lea.sflag [#allocation3], %s302_s4 }
 0x108   : > { %p413_p2 = pnand %p416_p1, %p580_p6 }
 0x10a   : > { %496 = dma.done.wait (!%p413_p2), %s303_s6, 256  }
 0x10b   : > { %498 = vsyncadd (!%p413_p2), %s303_s6, 4294967040  ;;  %p13_p3 = scmp.ge.s32.totalorder %s563_s18, 4   ;;  %s673_s12 = smov %s505_s13 }
 0x10c   : > { %s674_s13 = smov %s509_s14  ;;  %s675_s14 = smov %s574_s21 }
 0x10d   : > { %s676_s15 = smov %s563_s18  ;;  %15 = sbr.rel (!%p13_p3) target bundleno = 3 (0x3), region = 67 }
 0x114   :  { %308 = vsyncpa [#allocation3], 1 }
 0x115   :  { %310 = vsyncpa [#allocation3 + $0x1], 1 }

</bundles_post_ra>
